<compile_context>
chip_gen: v7x
topology: tpu7x:2x2x1
jax: 0.10.0
libtpu: 0.0.40
codegen_flags: <defaults>
</compile_context>

<pallas_src>
import jax
import jax.numpy as jnp
from jax.experimental import pallas as pl
from jax.experimental.pallas import tpu as pltpu


def _chomp_kernel(x_ref, o_ref):
    # Drop the last `chomp_size` lanes of every row (static slice, no compute).
    o_ref[...] = x_ref[:, : o_ref.shape[1]]


def chomp1d(x, chomp_size, *, tm=512):
    """x: (B, C, L) -> (B, C, L - chomp_size); equals x[:, :, :-chomp_size]."""
    assert x.ndim == 3, "Chomp1d expects (batch, channels, length)"
    B, C, L = x.shape
    assert 0 < chomp_size < L
    l_out = L - chomp_size
    M = B * C
    x2 = x.reshape(M, L)

    # Row tile: full M if small, otherwise a multiple-of-8 tile sized so that
    # (in + out) x double-buffering fits comfortably in v7x scoped VMEM.
    if M <= tm:
        tm = M
    else:
        tm = max(8, (tm // 8) * 8)

    out2 = pl.pallas_call(
        _chomp_kernel,
        grid=(pl.cdiv(M, tm),),
        in_specs=[pl.BlockSpec((tm, L), lambda i: (i, 0))],
        out_specs=pl.BlockSpec((tm, l_out), lambda i: (i, 0)),
        out_shape=jax.ShapeDtypeStruct((M, l_out), x.dtype),
        compiler_params=pltpu.CompilerParams(
            dimension_semantics=("parallel",)),  # shard row axis across TCs (v7x)
    )(x2)
    return out2.reshape(B, C, l_out)


if __name__ == "__main__":
    # Shapes a causal TCN block would feed Chomp1d: conv output (B, C, L), pad=2.
    B, C, L, chomp = 2, 32, 16, 2
    key = jax.random.PRNGKey(0)
    x = jax.random.normal(key, (B, C, L), dtype=jnp.float32)

    # Use a small row tile here so the example actually exercises the multi-step
    # pipelined grid (M = 64 rows -> 8 grid steps); default tm=512 for real sizes.
    out = jax.block_until_ready(chomp1d(x, chomp, tm=8))

    ref = x[:, :, :-chomp]
    assert out.shape == (B, C, L - chomp), out.shape
    assert bool(jnp.array_equal(out, ref)), "mismatch vs x[:, :, :-chomp_size]"
    print("KERNEL_OK")
</pallas_src>

<mosaic_0001>
module attributes {stable_mosaic.version = 11 : i64} {
  func.func @_chomp_kernel(%arg0: i32, %arg1: memref<8x16xf32, #tpu.memory_space<vmem>>, %arg2: memref<8x14xf32, #tpu.memory_space<vmem>>) attributes {dimension_semantics = [#tpu.dimension_semantics<parallel>], iteration_bounds = array<i64: 8>, scalar_prefetch = 0 : i64, scratch_operands = 0 : i64, tpu.core_type = #tpu.core_type<tc>, window_params = [{transform_indices = @transform_0, window_bounds = array<i64: 8, 16>}, {transform_indices = @transform_1, window_bounds = array<i64: 8, 14>}]} {
    %c0 = arith.constant 0 : index
    %c0_0 = arith.constant 0 : index
    %0 = vector.load %arg1[%c0, %c0_0] : memref<8x16xf32, #tpu.memory_space<vmem>>, vector<8x14xf32>
    %c0_1 = arith.constant 0 : index
    %c0_2 = arith.constant 0 : index
    %1 = vector.load %arg2[%c0_1, %c0_2] : memref<8x14xf32, #tpu.memory_space<vmem>>, vector<8x14xf32>
    tpu.vector_store %arg2[%c0_1, %c0_2], %0 {strides = array<i32>} : memref<8x14xf32, #tpu.memory_space<vmem>>, vector<8x14xf32>,
    return
  }
  func.func @transform_0(%arg0: i32) -> (i32, i32) {
    %c0_i32 = arith.constant 0 : i32
    %c0_i32_0 = arith.constant 0 : i32
    return %arg0, %c0_i32 : i32, i32
  }
  func.func @transform_1(%arg0: i32) -> (i32, i32) {
    %c0_i32 = arith.constant 0 : i32
    %c0_i32_0 = arith.constant 0 : i32
    return %arg0, %c0_i32 : i32, i32
  }
}

</mosaic_0001>

<bundles_post_ra>
// kernel: tpu_custom_call.1
= control target key start
LH: loop header
LB: loop body
LE: loop exit
PB: predicated region body
PF: predicated region fallthrough
CT: control target
= control target key end

     0   :  { %s189_s6 = smov 0   ;;  %s209_s0 = inlined_call_operand.vmem [shape: f32[64,16], index: 0, kind: input, shape index: {}]   ;;  %s210_s1 = inlined_call_operand.vmem [shape: f32[64,14], index: 1, kind: output, shape index: {}]  }
   0x1 LB: > { %s168_s7 = sadd.s32 4294967295, %s191_s6   ;;  %p172_p0 = scmp.ge.s32.totalorder %s191_s6, 1  ;;  %s191_s6 = sphi %s189_s6, %s11_s6  }
   0x2   : > { %p86_p1 = scmp.lt.s32.totalorder %s191_s6, 9 }
   0x4   : > { %p87_p2 = pnand %p172_p0, %p86_p1 }
   0x5   : > { %p104_p3 = scmp.lt.s32.totalorder (!%p87_p2), %s168_s7, 7  ;;  %vm113_vm0 = vcmask (!%p87_p2), 113664  }
   0x6   : > { %90 = sbr.rel (%p87_p2) target bundleno = 18 (0x12), region = 24 }
   0xd   : > { %s212_s7 = smov (!%p104_p3, %s168_s7), 7 }
   0xe   : > { %s173_s8 = sshll.u32 %s212_s7, 3 }
   0xf   : > { %s107_s11 = scalar_lea.vmem %s209_s0, %s173_s8  ;;  %s111_s14 = scalar_lea.vmem %s210_s1, %s173_s8 }
  0x10   : > { %v112_v0 = vld [vmem:[%s107_s11] sm:$0xff] }
  0x11   : > { %114 = vst.msk [vmem:[%s111_s14] sm:$0xff] %vm113_vm0, %v112_v0 }
  0x12 PF: > { %s11_s6 = sadd.s32 1, %s191_s6  }
  0x13   : > { %p8_p4 = scmp.ge.s32.totalorder %s11_s6, 10  }
  0x15   :  { %10 = sbr.rel (!%p8_p4) target bundleno = 1 (0x1), region = 54 }

</bundles_post_ra>
